<compile_context>
chip_gen: v5e
topology: v5e:2x2
jax: 0.10.0
libtpu: 0.0.40
codegen_flags: <defaults>
</compile_context>

<pallas_src>
import functools

import jax
import jax.numpy as jnp
from jax.experimental import pallas as pl
from jax.experimental.pallas import tpu as pltpu


def _critic_kernel(x_ref, w_ref, b_ref, w2_ref, b2_ref, out_ref):
    """x:[TB, F+64]  w:[F+64, F]  b:[1, F]  w2:[1, F]  b2:[1,1]  out:[TB,1]."""
    f32 = jnp.float32

    # fused (encoders + mlp1): one MXU matmul with deep K
    net = jnp.dot(x_ref[...], w_ref[...], preferred_element_type=f32) + b_ref[...]

    # F.leaky_relu default negative_slope = 0.01
    net = jnp.where(net > 0, net, f32(0.01) * net)

    # mlp2 (N=1): VPU multiply + lane reduction instead of a 128x1 MXU matmul
    out_ref[...] = (jnp.sum(net * w2_ref[...], axis=-1, keepdims=True)
                    + b2_ref[...])


def make_critic_params(key, feat_dim, task_feat_dim=32, traj_feat_dim=256,
                       cp_feat_dim=32, num_steps=10):
    """Deterministic synthetic parameters (weights stored as (in, out))."""
    ks = jax.random.split(key, 12)

    def w(k, shape, fan_in):
        return jax.random.normal(k, shape, jnp.float32) / jnp.sqrt(fan_in)

    params = dict(
        w_task=w(ks[0], (1, task_feat_dim), 1.0),
        b_task=w(ks[1], (1, task_feat_dim), 1.0) * 0.1,
        w_traj=w(ks[2], (num_steps * 6, traj_feat_dim), num_steps * 6),
        b_traj=w(ks[3], (1, traj_feat_dim), 1.0) * 0.1,
        w_cp=w(ks[4], (3, cp_feat_dim), 3.0),
        b_cp=w(ks[5], (1, cp_feat_dim), 1.0) * 0.1,
        # mlp1 weight split by concat block: [pixel | task | traj | cp]
        w1_pf=w(ks[6], (feat_dim, feat_dim), feat_dim),
        w1_task=w(ks[7], (task_feat_dim, feat_dim), feat_dim),
        w1_traj=w(ks[8], (traj_feat_dim, feat_dim), feat_dim),
        w1_cp=w(ks[9], (cp_feat_dim, feat_dim), feat_dim),
        b1=w(ks[10], (1, feat_dim), 1.0) * 0.1,
        w2=w(ks[11], (feat_dim, 1), feat_dim),
        b2=jnp.zeros((1, 1), jnp.float32),
    )
    return params


@functools.partial(jax.jit, static_argnames=("num_steps", "batch_tile"))
def critic_forward(params, pixel_feats, task, traj, contact_point,
                   num_steps=10, batch_tile=128):
    """Pallas implementation of Critic.forward.

    pixel_feats: [B, feat_dim]  float32
    task:        [B] or [B, 1]  float32
    traj:        [B, num_steps, 6] float32
    contact_point: [B, 3] float32
    returns:     [B] float32 (logits)
    """
    p = params
    B, F = pixel_feats.shape
    task2d = task.reshape(-1, 1).astype(jnp.float32)
    traj2d = traj.reshape(B, num_steps * 6).astype(jnp.float32)
    cp2d = contact_point.astype(jnp.float32)

    # ---- fold the three linear encoders into mlp1 (exact up to f32 reassoc) ----
    w_eff = jnp.concatenate(
        [p["w1_pf"],
         p["w_task"] @ p["w1_task"],
         p["w_traj"] @ p["w1_traj"],
         p["w_cp"] @ p["w1_cp"]], axis=0)                       # [F+64, F]
    b_eff = (p["b1"]
             + p["b_task"] @ p["w1_task"]
             + p["b_traj"] @ p["w1_traj"]
             + p["b_cp"] @ p["w1_cp"])                          # [1, F]
    w2_row = p["w2"].reshape(1, F)                              # [1, F]
    b2 = p["b2"].reshape(1, 1)                                  # [1, 1]

    # single contiguous activation stream: [pixel | task | traj | cp]
    x_cat = jnp.concatenate(
        [pixel_feats.astype(jnp.float32), task2d, traj2d, cp2d], axis=-1)
    K = x_cat.shape[1]                                          # F + 1 + 6*num_steps + 3

    TB = min(batch_tile, B)
    assert B % TB == 0, "batch must be a multiple of the batch tile"
    grid = (B // TB,)

    def row_spec(ncols):
        return pl.BlockSpec((TB, ncols), lambda i: (i, 0))

    def full_spec(shape):
        return pl.BlockSpec(shape, lambda i: (0, 0))

    out = pl.pallas_call(
        _critic_kernel,
        out_shape=jax.ShapeDtypeStruct((B, 1), jnp.float32),
        grid_spec=pltpu.PrefetchScalarGridSpec(
            num_scalar_prefetch=0,
            grid=grid,
            in_specs=[
                row_spec(K),                    # x_cat
                full_spec(w_eff.shape),         # fused mlp1 weight
                full_spec(b_eff.shape),         # fused bias
                full_spec(w2_row.shape),        # mlp2 weight (row)
                full_spec(b2.shape),            # mlp2 bias
            ],
            out_specs=pl.BlockSpec((TB, 1), lambda i: (i, 0)),
        ),
        compiler_params=pltpu.CompilerParams(
            dimension_semantics=("parallel",)),
    )(x_cat, w_eff, b_eff, w2_row, b2)

    return out[:, 0]  # squeeze(-1)


def critic_forward_ref(params, pixel_feats, task, traj, contact_point,
                       num_steps=10):
    """Pure-JAX reference mirroring the PyTorch forward (unfolded)."""
    B = traj.shape[0]
    p = params
    task2d = task.reshape(-1, 1)
    traj2d = traj.reshape(B, num_steps * 6)
    task_feat = task2d @ p["w_task"] + p["b_task"]
    traj_feat = traj2d @ p["w_traj"] + p["b_traj"]
    cp_feat = contact_point @ p["w_cp"] + p["b_cp"]
    net = jnp.concatenate([pixel_feats, task_feat, traj_feat, cp_feat], -1)
    w1 = jnp.concatenate([p["w1_pf"], p["w1_task"], p["w1_traj"], p["w1_cp"]], 0)
    net = net @ w1 + p["b1"]
    net = jnp.where(net > 0, net, 0.01 * net)
    net = net @ p["w2"] + p["b2"]
    return net[:, 0]


if __name__ == "__main__":
    feat_dim = 128
    num_steps = 10
    B = 256            # 2 grid steps at TB=128 (keeps both v7x TCs busy)

    key = jax.random.PRNGKey(0)
    kp, k1, k2, k3, k4 = jax.random.split(key, 5)

    params = make_critic_params(kp, feat_dim, num_steps=num_steps)

    pixel_feats = jax.random.normal(k1, (B, feat_dim), jnp.float32)
    task = jax.random.normal(k2, (B,), jnp.float32)
    traj = jax.random.normal(k3, (B, num_steps, 6), jnp.float32)
    contact_point = jax.random.normal(k4, (B, 3), jnp.float32)

    out = critic_forward(params, pixel_feats, task, traj, contact_point,
                         num_steps=num_steps, batch_tile=128)
    out = jax.block_until_ready(out)

    ref = critic_forward_ref(params, pixel_feats, task, traj, contact_point,
                             num_steps=num_steps)
    assert out.shape == (B,)
    assert jnp.allclose(out, ref, atol=2e-4, rtol=1e-4), (out, ref)

    # TODO(synk): forward_n / BCEWithLogitsLoss / L1Loss helpers are not part of
    # the fused forward kernel (trivial elementwise ops, left to plain JAX).
    print("KERNEL_OK")
</pallas_src>

<mosaic_0001>
module attributes {stable_mosaic.version = 11 : i64} {
  func.func @_critic_kernel(%arg0: i32, %arg1: memref<128x192xf32, #tpu.memory_space<vmem>>, %arg2: memref<192x128xf32, #tpu.memory_space<vmem>>, %arg3: memref<1x128xf32, #tpu.memory_space<vmem>>, %arg4: memref<1x128xf32, #tpu.memory_space<vmem>>, %arg5: memref<1x1xf32, #tpu.memory_space<vmem>>, %arg6: memref<128x1xf32, #tpu.memory_space<vmem>>) attributes {dimension_semantics = [#tpu.dimension_semantics<parallel>], iteration_bounds = array<i64: 2>, scalar_prefetch = 0 : i64, scratch_operands = 0 : i64, tpu.core_type = #tpu.core_type<tc>, window_params = [{transform_indices = @transform_0, window_bounds = array<i64: 128, 192>}, {pipeline_mode = #tpu.pipeline_mode<synchronous>, transform_indices = @transform_1, window_bounds = array<i64: 192, 128>}, {pipeline_mode = #tpu.pipeline_mode<synchronous>, transform_indices = @transform_2, window_bounds = array<i64: 1, 128>}, {pipeline_mode = #tpu.pipeline_mode<synchronous>, transform_indices = @transform_3, window_bounds = array<i64: 1, 128>}, {pipeline_mode = #tpu.pipeline_mode<synchronous>, transform_indices = @transform_4, window_bounds = array<i64: 1, 1>}, {transform_indices = @transform_5, window_bounds = array<i64: 128, 1>}]} {
    %c0 = arith.constant 0 : index
    %c0_0 = arith.constant 0 : index
    %0 = vector.load %arg1[%c0, %c0_0] : memref<128x192xf32, #tpu.memory_space<vmem>>, vector<128x192xf32>
    %c0_1 = arith.constant 0 : index
    %c0_2 = arith.constant 0 : index
    %1 = vector.load %arg2[%c0_1, %c0_2] : memref<192x128xf32, #tpu.memory_space<vmem>>, vector<192x128xf32>
    %cst = arith.constant dense<0.000000e+00> : vector<128x128xf32>
    %2 = tpu.matmul %0, %1, %cst {dimension_numbers = #tpu.dot_dimension_numbers<[1], [0], [0], [1], [0, 0, 1, 1], [], []>} : vector<128x192xf32>, vector<192x128xf32>, vector<128x128xf32> -> vector<128x128xf32>
    %c0_3 = arith.constant 0 : index
    %c0_4 = arith.constant 0 : index
    %3 = vector.load %arg3[%c0_3, %c0_4] : memref<1x128xf32, #tpu.memory_space<vmem>>, vector<1x128xf32>
    %4 = vector.broadcast %3 : vector<1x128xf32> to vector<128x128xf32>
    %5 = arith.addf %2, %4 : vector<128x128xf32>
    %cst_5 = arith.constant 0.000000e+00 : f32
    %6 = vector.broadcast %cst_5 : f32 to vector<128x128xf32>
    %7 = arith.cmpf ogt, %5, %6 : vector<128x128xf32>
    %cst_6 = arith.constant 0.00999999977 : f32
    %8 = vector.broadcast %cst_6 : f32 to vector<128x128xf32>
    %9 = arith.mulf %8, %5 : vector<128x128xf32>
    %10 = arith.select %7, %5, %9 : vector<128x128xi1>, vector<128x128xf32>
    %c0_7 = arith.constant 0 : index
    %c0_8 = arith.constant 0 : index
    %11 = vector.load %arg4[%c0_7, %c0_8] : memref<1x128xf32, #tpu.memory_space<vmem>>, vector<1x128xf32>
    %12 = vector.broadcast %11 : vector<1x128xf32> to vector<128x128xf32>
    %13 = arith.mulf %10, %12 : vector<128x128xf32>
    %cst_9 = arith.constant dense<0.000000e+00> : vector<128xf32>
    %14 = vector.multi_reduction <add>, %13, %cst_9 [1] : vector<128x128xf32> to vector<128xf32>
    %15 = vector.shape_cast %14 : vector<128xf32> to vector<128x1xf32>
    %c0_10 = arith.constant 0 : index
    %c0_11 = arith.constant 0 : index
    %16 = vector.load %arg5[%c0_10, %c0_11] : memref<1x1xf32, #tpu.memory_space<vmem>>, vector<1x1xf32>
    %17 = vector.broadcast %16 : vector<1x1xf32> to vector<128x1xf32>
    %18 = arith.addf %15, %17 : vector<128x1xf32>
    %c0_12 = arith.constant 0 : index
    %c0_13 = arith.constant 0 : index
    %19 = vector.load %arg6[%c0_12, %c0_13] : memref<128x1xf32, #tpu.memory_space<vmem>>, vector<128x1xf32>
    tpu.vector_store %arg6[%c0_12, %c0_13], %18 {strides = array<i32>} : memref<128x1xf32, #tpu.memory_space<vmem>>, vector<128x1xf32>,
    return
  }
  func.func @transform_0(%arg0: i32) -> (i32, i32) {
    %c0_i32 = arith.constant 0 : i32
    %c0_i32_0 = arith.constant 0 : i32
    return %arg0, %c0_i32 : i32, i32
  }
  func.func @transform_1(%arg0: i32) -> (i32, i32) {
    %c0_i32 = arith.constant 0 : i32
    %c0_i32_0 = arith.constant 0 : i32
    %c0_i32_1 = arith.constant 0 : i32
    return %c0_i32, %c0_i32_0 : i32, i32
  }
  func.func @transform_2(%arg0: i32) -> (i32, i32) {
    %c0_i32 = arith.constant 0 : i32
    %c0_i32_0 = arith.constant 0 : i32
    %c0_i32_1 = arith.constant 0 : i32
    return %c0_i32, %c0_i32_0 : i32, i32
  }
  func.func @transform_3(%arg0: i32) -> (i32, i32) {
    %c0_i32 = arith.constant 0 : i32
    %c0_i32_0 = arith.constant 0 : i32
    %c0_i32_1 = arith.constant 0 : i32
    return %c0_i32, %c0_i32_0 : i32, i32
  }
  func.func @transform_4(%arg0: i32) -> (i32, i32) {
    %c0_i32 = arith.constant 0 : i32
    %c0_i32_0 = arith.constant 0 : i32
    %c0_i32_1 = arith.constant 0 : i32
    return %c0_i32, %c0_i32_0 : i32, i32
  }
  func.func @transform_5(%arg0: i32) -> (i32, i32) {
    %c0_i32 = arith.constant 0 : i32
    %c0_i32_0 = arith.constant 0 : i32
    return %arg0, %c0_i32 : i32, i32
  }
}

</mosaic_0001>

<bundles_post_ra>
// kernel: critic_forward.1
= control target key start
LH: loop header
LB: loop body
LE: loop exit
PB: predicated region body
PF: predicated region fallthrough
CT: control target
= control target key end

     0   :  { %s770_s20 = smov 0   ;;  %s992_s0 = inlined_call_operand.vmem [shape: f32[256,192], index: 0, kind: input, shape index: {}]   ;;  %s993_s1 = inlined_call_operand.vmem [shape: f32[192,128], index: 1, kind: input, shape index: {}]   ;;  %s994_s2 = inlined_call_operand.vmem [shape: f32[1,128], index: 2, kind: input, shape index: {}]   ;;  %s995_s3 = inlined_call_operand.vmem [shape: f32[1,128], index: 3, kind: input, shape index: {}]   ;;  %s996_s4 = inlined_call_operand.<no memory space> [shape: f32[1,1], index: 4, kind: input, shape index: {}]   ;;  %s997_s5 = inlined_call_operand.vmem [shape: f32[256,1], index: 5, kind: output, shape index: {}]  }
   0x1   :  { %v10_v0 = vstv %s996_s4 }
   0x2   :  { %11 = vst [vmem:[#allocation2] sm:$0x1] %v10_v0 }
   0x3 LB: > { %s665_s21 = sadd.s32 4294967295, %s735_s20   ;;  %p669_p0 = scmp.ge.s32.totalorder %s735_s20, 1  ;;  %s735_s20 = sphi %s770_s20, %s17_s20  }
   0x4   : > { %p191_p1 = scmp.lt.s32.totalorder %s735_s20, 3 }
   0x6   : > { %p192_p2 = pnand %p669_p0, %p191_p1 }
   0x7   : > { %s670_s27 = sshll.u32 (!%p192_p2), %s665_s21, 4 }
   0x8   : > { %195 = sbr.rel (%p192_p2) target bundleno = 370 (0x172), region = 40  ;;  %p221_p3 = scmp.lt.s32.totalorder (!%p192_p2), %s670_s27, 31 }
   0xd   : > { %v280_v1 = vld [vmem:[%s993_s1 + $0x78] sm:$0xff]  ;;  %v279_v3 = vld [vmem:[%s993_s1 + $0x70] sm:$0xff]  ;;  %v278_v5 = vld [vmem:[%s993_s1 + $0x68] sm:$0xff]  ;;  %s999_s27 = smov (!%p221_p3, %s670_s27), 31  ;;  %vm293_vm0 = vcmask 523264  }
   0xe   : > { %v288_v2 = vld [vmem:[%s993_s1 + $0xb8] sm:$0xff]  ;;  %342 = vmatpush.msra.mxu0 %v280_v1  ;;  %694 = vmatpush.msra.mxu2 %v280_v1  ;;  %v287_v4 = vld [vmem:[%s993_s1 + $0xb0] sm:$0xff]  ;;  %v286_v6 = vld [vmem:[%s993_s1 + $0xa8] sm:$0xff]  ;;  %s693_s19 = sshll.u32 %s999_s27, 4 }
   0xf   : > { %415 = vmatpush.msra.mxu1 %v288_v2  ;;  %710 = vmatpush.msra.mxu3 %v288_v2  ;;  %v277_v7 = vld [vmem:[%s993_s1 + $0x60] sm:$0xff]  ;;  %v276_v9 = vld [vmem:[%s993_s1 + $0x58] sm:$0xff]  ;;  %v275_v11 = vld [vmem:[%s993_s1 + $0x50] sm:$0xff]  ;;  %s826_s29 = scalar_lea.vmem %s992_s0, %s693_s19 }
  0x10   : > { %343 = vmatpush.msra.mxu0 %v279_v3  ;;  %695 = vmatpush.msra.mxu2 %v279_v3  ;;  %v285_v8 = vld [vmem:[%s993_s1 + $0xa0] sm:$0xff]  ;;  %v284_v10 = vld [vmem:[%s993_s1 + $0x98] sm:$0xff]  ;;  %v283_v12 = vld [vmem:[%s993_s1 + $0x90] sm:$0xff] }
  0x11   : > { %416 = vmatpush.msra.mxu1 %v287_v4  ;;  %711 = vmatpush.msra.mxu3 %v287_v4  ;;  %v274_v13 = vld [vmem:[%s993_s1 + $0x48] sm:$0xff]  ;;  %v273_v15 = vld [vmem:[%s993_s1 + $0x40] sm:$0xff]  ;;  %v272_v18 = vld [vmem:[%s993_s1 + $0x38] sm:$0xff] }
  0x12   : > { %344 = vmatpush.msra.mxu0 %v278_v5  ;;  %696 = vmatpush.msra.mxu2 %v278_v5  ;;  %v282_v14 = vld [vmem:[%s993_s1 + $0x88] sm:$0xff]  ;;  %v281_v16 = vld [vmem:[%s993_s1 + $0x80] sm:$0xff]  ;;  %v271_v19 = vld [vmem:[%s993_s1 + $0x30] sm:$0xff] }
  0x13   : > { %417 = vmatpush.msra.mxu1 %v286_v6  ;;  %712 = vmatpush.msra.mxu3 %v286_v6  ;;  %v234_v17 = vld [vmem:[%s826_s29 + $0x8] sm:$0xff]  ;;  %v252_v20 = vld [vmem:[%s826_s29 + $0x98] sm:$0xff]  ;;  %v269_v22 = vld [vmem:[%s993_s1 + $0x20] sm:$0xff] }
  0x14   : > { %345 = vmatpush.msra.mxu0 %v277_v7  ;;  %697 = vmatpush.msra.mxu2 %v277_v7  ;;  %v270_v21 = vld [vmem:[%s993_s1 + $0x28] sm:$0xff]  ;;  %v236_v23 = vld [vmem:[%s826_s29 + $0x18] sm:$0xff]  ;;  %v267_v25 = vld [vmem:[%s993_s1 + $0x10] sm:$0xff] }
  0x15   : > { %418 = vmatpush.msra.mxu1 %v285_v8  ;;  %713 = vmatpush.msra.mxu3 %v285_v8  ;;  %v268_v24 = vld [vmem:[%s993_s1 + $0x18] sm:$0xff]  ;;  %v254_v26 = vld [vmem:[%s826_s29 + $0xa8] sm:$0xff]  ;;  %v265_v28 = vld [vmem:[%s993_s1] sm:$0xff] }
  0x16   : > { %346 = vmatpush.msra.mxu0 %v276_v9  ;;  %698 = vmatpush.msra.mxu2 %v276_v9  ;;  %v266_v27 = vld [vmem:[%s993_s1 + $0x8] sm:$0xff]  ;;  %v233_v29 = vld [vmem:[%s826_s29] sm:$0xff]  ;;  %v247_v30 = vld [vmem:[%s826_s29 + $0x70] sm:$0xff] }
  0x17   : > { %419 = vmatpush.msra.mxu1 %v284_v10  ;;  %714 = vmatpush.msra.mxu3 %v284_v10  ;;  %v238_v31 = vld [vmem:[%s826_s29 + $0x28] sm:$0xff]  ;;  %v256_v32 = vld [vmem:[%s826_s29 + $0xb8] sm:$0xff]  ;;  %v235_v33 = vld [vmem:[%s826_s29 + $0x10] sm:$0xff] }
  0x18   : > { %347 = vmatpush.msra.mxu0 %v275_v11  ;;  %699 = vmatpush.msra.mxu2 %v275_v11  ;;  %v249_v34 = vld [vmem:[%s826_s29 + $0x80] sm:$0xff]  ;;  %v240_v35 = vld [vmem:[%s826_s29 + $0x38] sm:$0xff]  ;;  %v258_v36 = vld [vmem:[%s826_s29 + $0xc8] sm:$0xff] }
  0x19   : > { %420 = vmatpush.msra.mxu1 %v283_v12  ;;  %715 = vmatpush.msra.mxu3 %v283_v12  ;;  %v237_v37 = vld [vmem:[%s826_s29 + $0x20] sm:$0xff]  ;;  %v251_v38 = vld [vmem:[%s826_s29 + $0x90] sm:$0xff]  ;;  %v242_v39 = vld [vmem:[%s826_s29 + $0x48] sm:$0xff] }
  0x1a   : > { %348 = vmatpush.msra.mxu0 %v274_v13  ;;  %700 = vmatpush.msra.mxu2 %v274_v13  ;;  %v260_v40 = vld [vmem:[%s826_s29 + $0xd8] sm:$0xff]  ;;  %v239_v41 = vld [vmem:[%s826_s29 + $0x30] sm:$0xff]  ;;  %v253_v42 = vld [vmem:[%s826_s29 + $0xa0] sm:$0xff] }
  0x1b   : > { %421 = vmatpush.msra.mxu1 %v282_v14  ;;  %716 = vmatpush.msra.mxu3 %v282_v14  ;;  %v244_v43 = vld [vmem:[%s826_s29 + $0x58] sm:$0xff]  ;;  %v262_v44 = vld [vmem:[%s826_s29 + $0xe8] sm:$0xff]  ;;  %v241_v45 = vld [vmem:[%s826_s29 + $0x40] sm:$0xff] }
  0x1c   : > { %349 = vmatpush.msra.mxu0 %v273_v15  ;;  %701 = vmatpush.msra.mxu2 %v273_v15  ;;  %v255_v46 = vld [vmem:[%s826_s29 + $0xb0] sm:$0xff]  ;;  %v246_v47 = vld [vmem:[%s826_s29 + $0x68] sm:$0xff]  ;;  %v264_v48 = vld [vmem:[%s826_s29 + $0xf8] sm:$0xff] }
  0x1d   : > { %422 = vmatpush.msra.mxu1 %v281_v16  ;;  %717 = vmatpush.msra.mxu3 %v281_v16  ;;  %v243_v49 = vld [vmem:[%s826_s29 + $0x50] sm:$0xff]  ;;  %v257_v50 = vld [vmem:[%s826_s29 + $0xc0] sm:$0xff]  ;;  %v248_v51 = vld [vmem:[%s826_s29 + $0x78] sm:$0xff] }
  0x1e   : > { %675 = vmatmul.msk.f32.vlgmr.msra.gmra.mxu1 %vm293_vm0, %v234_v17  ;;  %350 = vmatpush.msra.mxu0 %v272_v18  ;;  %v245_v52 = vld [vmem:[%s826_s29 + $0x60] sm:$0xff]  ;;  %v259_v53 = vld [vmem:[%s826_s29 + $0xd0] sm:$0xff]  ;;  %v250_v54 = vld [vmem:[%s826_s29 + $0x88] sm:$0xff] }
  0x1f   : > { %702 = vmatpush.msra.mxu2 %v272_v18  ;;  %684 = vmatmul.msk.f32.vlgmr.msra.gmra.mxu3 %vm293_vm0, %v252_v20  ;;  %v261_v55 = vld [vmem:[%s826_s29 + $0xe0] sm:$0xff]  ;;  %v263_v56 = vld [vmem:[%s826_s29 + $0xf0] sm:$0xff]  ;;  %s674_s29 = sshll.u32 %s999_s27, 3 }
  0x20   : > { %351 = vmatpush.msra.mxu0 %v271_v19  ;;  %v909_v59 = vld [vmem:[%s994_s2] ss:$0 sm:$0xff]  ;;  %s955_s8 = scalar_lea.vmem %s997_s5, %s674_s29 }
  0x21   : > { %703 = vmatpush.msra.mxu2 %v271_v19  ;;  %v915_v0 = vld [vmem:[%s995_s3] ss:$0 sm:$0xff] }
  0x22   : > { %352 = vmatpush.msra.mxu0 %v270_v21 }
  0x23   : > { %704 = vmatpush.msra.mxu2 %v270_v21 }
  0x24   : > { %353 = vmatpush.msra.mxu0 %v269_v22 }
  0x25   : > { %705 = vmatpush.msra.mxu2 %v269_v22 }
  0x26   : > { %676 = vmatmul.msk.f32.gmra.mxu1 %vm293_vm0, %v236_v23  ;;  %354 = vmatpush.msra.mxu0 %v268_v24 }
  0x27   : > { %706 = vmatpush.msra.mxu2 %v268_v24  ;;  %685 = vmatmul.msk.f32.gmra.mxu3 %vm293_vm0, %v254_v26 }
  0x28   : > { %355 = vmatpush.msra.mxu0 %v267_v25 }
  0x29   : > { %707 = vmatpush.msra.mxu2 %v267_v25 }
  0x2a   : > { %356 = vmatpush.msra.mxu0 %v266_v27 }
  0x2b   : > { %708 = vmatpush.msra.mxu2 %v266_v27 }
  0x2c   : > { %357 = vmatpush.msra.mxu0 %v265_v28 }
  0x2d   : > { %709 = vmatpush.msra.mxu2 %v265_v28  ;;  %358 = vmatmul.f32.vlgmr.msra.gmra.mxu0 %v233_v29 }
  0x2e   : > { %379 = vmatmul.f32.vlgmr.msra.gmra.mxu2 %v247_v30  ;;  %677 = vmatmul.msk.f32.gmra.mxu1 %vm293_vm0, %v238_v31 }
  0x2f   : > { %686 = vmatmul.msk.f32.gmra.mxu3 %vm293_vm0, %v256_v32 }
  0x35   : > { %361 = vmatmul.f32.gmra.mxu0 %v235_v33 }
  0x36   : > { %382 = vmatmul.f32.gmra.mxu2 %v249_v34  ;;  %678 = vmatmul.msk.f32.gmra.mxu1 %vm293_vm0, %v240_v35 }
  0x37   : > { %687 = vmatmul.msk.f32.gmra.mxu3 %vm293_vm0, %v258_v36 }
  0x3d   : > { %364 = vmatmul.f32.gmra.mxu0 %v237_v37 }
  0x3e   : > { %385 = vmatmul.f32.gmra.mxu2 %v251_v38  ;;  %679 = vmatmul.msk.f32.gmra.mxu1 %vm293_vm0, %v242_v39 }
  0x3f   : > { %688 = vmatmul.msk.f32.gmra.mxu3 %vm293_vm0, %v260_v40 }
  0x45   : > { %367 = vmatmul.f32.gmra.mxu0 %v239_v41 }
  0x46   : > { %388 = vmatmul.f32.gmra.mxu2 %v253_v42  ;;  %680 = vmatmul.msk.f32.gmra.mxu1 %vm293_vm0, %v244_v43 }
  0x47   : > { %689 = vmatmul.msk.f32.gmra.mxu3 %vm293_vm0, %v262_v44 }
  0x4d   : > { %370 = vmatmul.f32.gmra.mxu0 %v241_v45 }
  0x4e   : > { %391 = vmatmul.f32.gmra.mxu2 %v255_v46  ;;  %681 = vmatmul.msk.f32.gmra.mxu1 %vm293_vm0, %v246_v47 }
  0x4f   : > { %690 = vmatmul.msk.f32.gmra.mxu3 %vm293_vm0, %v264_v48 }
  0x55   : > { %373 = vmatmul.f32.gmra.mxu0 %v243_v49 }
  0x56   : > { %394 = vmatmul.f32.gmra.mxu2 %v257_v50  ;;  %682 = vmatmul.msk.f32.gmra.mxu1 %vm293_vm0, %v248_v51 }
  0x5d   : > { %376 = vmatmul.f32.gmra.mxu0 %v245_v52 }
  0x5e   : > { %397 = vmatmul.f32.gmra.mxu2 %v259_v53  ;;  %683 = vmatmul.msk.f32.gmra.mxu1 %vm293_vm0, %v250_v54 }
  0x66   : > { %400 = vmatmul.f32.gmra.mxu2 %v261_v55 }
  0x6e   : > { %403 = vmatmul.f32.gmra.mxu2 %v263_v56 }
  0x9b   : > { %v424_v57 = vpop.f32.mrf.mxu1 }
  0xa2   : > { %v451_v9 = vpop.f32.mrf.mxu3 }
  0xa3   : > { %v427_v58 = vpop.f32.mrf.mxu1 }
  0xaa   : > { %v359_v60 = vpop.f32.mrf.mxu0  ;;  %v454_v19 = vpop.f32.mrf.mxu3 }
  0xab   : > { %v360_v61 = vadd.f32 %v909_v59, %v359_v60  ;;  %v430_v62 = vpop.f32.mrf.mxu1 }
  0xad   : > { %v425_v63 = vadd.f32 %v424_v57, %v360_v61 }
  0xaf   : > { %vm472_vm1 = vcmp.gt.f32.partialorder %v425_v63, 0.0  ;;  %v488_v1 = vmul.f32 0.01, %v425_v63 }
  0xb1   : > { %v380_v2 = vpop.f32.mrf.mxu2  ;;  %v504_v3 = vsel %vm472_vm1, %v425_v63, %v488_v1  ;;  %vm592_vm1 = vcmask 7168  }
  0xb2   : > { %v362_v4 = vpop.f32.mrf.mxu0  ;;  %v524_v5 = vmul.f32 %v915_v0, %v504_v3  ;;  %v457_v35 = vpop.f32.mrf.mxu3  ;;  %v381_v48 = vadd.f32 %v909_v59, %v380_v2 }
  0xb3   : > { %v363_v6 = vadd.f32 %v909_v59, %v362_v4  ;;  %v433_v7 = vpop.f32.mrf.mxu1 }
  0xb4   : > { %540 = vadd.xlane.f32.xlu0 %v524_v5 }
  0xb5   : > { %v428_v8 = vadd.f32 %v427_v58, %v363_v6 }
  0xb7   : > { %vm473_vm2 = vcmp.gt.f32.partialorder %v428_v8, 0.0  ;;  %v489_v10 = vmul.f32 0.01, %v428_v8 }
  0xb9   : > { %v919_v11 = vpop.f32.mrf.mxu2  ;;  %v505_v12 = vsel %vm473_vm2, %v428_v8, %v489_v10 }
  0xba   : > { %v365_v13 = vpop.f32.mrf.mxu0  ;;  %v525_v14 = vmul.f32 %v915_v0, %v505_v12  ;;  %v460_v55 = vpop.f32.mrf.mxu3  ;;  %v384_v10 = vadd.f32 %v909_v59, %v919_v11 }
  0xbb   : > { %v366_v15 = vadd.f32 %v909_v59, %v365_v13  ;;  %v436_v16 = vpop.f32.mrf.mxu1 }
  0xbc   : > { %542 = vadd.xlane.f32.xlu0 %v525_v14 }
  0xbd   : > { %v431_v17 = vadd.f32 %v430_v62, %v366_v15 }
  0xbf   : > { %vm474_vm3 = vcmp.gt.f32.partialorder %v431_v17, 0.0  ;;  %v490_v18 = vmul.f32 0.01, %v431_v17 }
  0xc1   : > { %v386_v20 = vpop.f32.mrf.mxu2  ;;  %v506_v21 = vsel %vm474_vm3, %v431_v17, %v490_v18 }
  0xc2   : > { %v387_v22 = vadd.f32 %v909_v59, %v386_v20  ;;  %v368_v23 = vpop.f32.mrf.mxu0  ;;  %v526_v24 = vmul.f32 %v915_v0, %v506_v21  ;;  %v463_v12 = vpop.f32.mrf.mxu3 }
  0xc3   : > { %v369_v25 = vadd.f32 %v909_v59, %v368_v23  ;;  %v439_v26 = vpop.f32.mrf.mxu1 }
  0xc4   : > { %v452_v27 = vadd.f32 %v451_v9, %v387_v22  ;;  %544 = vadd.xlane.f32.xlu1 %v526_v24 }
  0xc5   : > { %v434_v28 = vadd.f32 %v433_v7, %v369_v25 }
  0xc6   : > { %v497_v29 = vmul.f32 0.01, %v452_v27  ;;  %vm481_vm4 = vcmp.gt.f32.partialorder %v452_v27, 0.0 }
  0xc7   : > { %vm475_vm5 = vcmp.gt.f32.partialorder %v434_v28, 0.0  ;;  %v491_v30 = vmul.f32 0.01, %v434_v28 }
  0xc8   : > { %v513_v31 = vsel %vm481_vm4, %v452_v27, %v497_v29 }
  0xc9   : > { %v389_v32 = vpop.f32.mrf.mxu2  ;;  %v533_v33 = vmul.f32 %v915_v0, %v513_v31  ;;  %v507_v34 = vsel %vm475_vm5, %v434_v28, %v491_v30 }
  0xca   : > { %v390_v36 = vadd.f32 %v909_v59, %v389_v32  ;;  %v371_v37 = vpop.f32.mrf.mxu0  ;;  %v527_v38 = vmul.f32 %v915_v0, %v507_v34 }
  0xcb   : > { %v372_v39 = vadd.f32 %v909_v59, %v371_v37  ;;  %v442_v40 = vpop.f32.mrf.mxu1  ;;  %558 = vadd.xlane.f32.xlu0 %v533_v33 }
  0xcc   : > { %v455_v41 = vadd.f32 %v454_v19, %v390_v36  ;;  %546 = vadd.xlane.f32.xlu1 %v527_v38 }
  0xcd   : > { %v437_v42 = vadd.f32 %v436_v16, %v372_v39 }
  0xce   : > { %v498_v43 = vmul.f32 0.01, %v455_v41  ;;  %vm482_vm6 = vcmp.gt.f32.partialorder %v455_v41, 0.0 }
  0xcf   : > { %vm476_vm7 = vcmp.gt.f32.partialorder %v437_v42, 0.0  ;;  %v492_v44 = vmul.f32 0.01, %v437_v42 }
  0xd0   : > { %v514_v45 = vsel %vm482_vm6, %v455_v41, %v498_v43 }
  0xd1   : > { %v392_v46 = vpop.f32.mrf.mxu2  ;;  %v508_v47 = vsel %vm476_vm7, %v437_v42, %v492_v44  ;;  %v534_v52 = vmul.f32 %v915_v0, %v514_v45  ;;  %v728_v45 = vld [vmem:[#allocation2] ss:$0 sm:$0xff] }
  0xd2   : > { %v393_v49 = vadd.f32 %v909_v59, %v392_v46  ;;  %v374_v50 = vpop.f32.mrf.mxu0  ;;  %v528_v51 = vmul.f32 %v915_v0, %v508_v47 }
  0xd3   : > { %v375_v53 = vadd.f32 %v909_v59, %v374_v50  ;;  %v445_v54 = vpop.f32.mrf.mxu1 }
  0xd4   : > { %v446_v56 = vadd.f32 %v445_v54, %v381_v48  ;;  %v458_v57 = vadd.f32 %v457_v35, %v393_v49  ;;  %548 = vadd.xlane.f32.xlu2 %v528_v51  ;;  %560 = vadd.xlane.f32.xlu1 %v534_v52 }
  0xd5   : > { %v440_v61 = vadd.f32 %v439_v26, %v375_v53  ;;  %v466_v26 = vpop.f32.mrf.mxu3 }
  0xd6   : > { %v495_v58 = vmul.f32 0.01, %v446_v56  ;;  %v499_v60 = vmul.f32 0.01, %v458_v57  ;;  %vm483_vm8 = vcmp.gt.f32.partialorder %v458_v57, 0.0  ;;  %vm479_vm9 = vcmp.gt.f32.partialorder %v446_v56, 0.0 }
  0xd7   : > { %v493_v7 = vmul.f32 0.01, %v440_v61  ;;  %vm477_vm10 = vcmp.gt.f32.partialorder %v440_v61, 0.0 }
  0xd8   : > { %v515_v62 = vsel %vm483_vm8, %v458_v57, %v499_v60  ;;  %v511_v63 = vsel %vm479_vm9, %v446_v56, %v495_v58 }
  0xd9   : > { %v395_v1 = vpop.f32.mrf.mxu2  ;;  %v535_v4 = vmul.f32 %v915_v0, %v515_v62  ;;  %v531_v5 = vmul.f32 %v915_v0, %v511_v63  ;;  %v509_v16 = vsel %vm477_vm10, %v440_v61, %v493_v7 }
  0xda   : > { %v396_v2 = vadd.f32 %v909_v59, %v395_v1  ;;  %v377_v3 = vpop.f32.mrf.mxu0  ;;  %v529_v21 = vmul.f32 %v915_v0, %v509_v16 }
  0xdb   : > { %v378_v6 = vadd.f32 %v909_v59, %v377_v3  ;;  %v448_v8 = vpop.f32.mrf.mxu1 }
  0xdc   : > { %v461_v9 = vadd.f32 %v460_v55, %v396_v2  ;;  %562 = vadd.xlane.f32.xlu2 %v535_v4  ;;  %554 = vadd.xlane.f32.xlu1 %v531_v5  ;;  %v449_v15 = vadd.f32 %v448_v8, %v384_v10 }
  0xdd   : > { %v443_v13 = vadd.f32 %v442_v40, %v378_v6  ;;  %v469_v38 = vpop.f32.mrf.mxu3 }
  0xde   : > { %v500_v14 = vmul.f32 0.01, %v461_v9  ;;  %vm484_vm11 = vcmp.gt.f32.partialorder %v461_v9, 0.0  ;;  %v496_v23 = vmul.f32 0.01, %v449_v15  ;;  %vm480_vm13 = vcmp.gt.f32.partialorder %v449_v15, 0.0 }
  0xdf   : > { %v494_v22 = vmul.f32 0.01, %v443_v13  ;;  %vm478_vm12 = vcmp.gt.f32.partialorder %v443_v13, 0.0 }
  0xe0   : > { %v516_v17 = vsel %vm484_vm11, %v461_v9, %v500_v14  ;;  %v512_v27 = vsel %vm480_vm13, %v449_v15, %v496_v23 }
  0xe1   : > { %v398_v18 = vpop.f32.mrf.mxu2  ;;  %v536_v19 = vmul.f32 %v915_v0, %v516_v17  ;;  %v510_v25 = vsel %vm478_vm12, %v443_v13, %v494_v22  ;;  %v532_v33 = vmul.f32 %v915_v0, %v512_v27 }
  0xe2   : > { %v399_v20 = vadd.f32 %v909_v59, %v398_v18  ;;  %v530_v31 = vmul.f32 %v915_v0, %v510_v25 }
  0xe3   : > { %564 = vadd.xlane.f32.xlu0 %v536_v19 }
  0xe4   : > { %v464_v24 = vadd.f32 %v463_v12, %v399_v20  ;;  %550 = vadd.xlane.f32.xlu2 %v529_v21 }
  0xe6   : > { %v501_v11 = vmul.f32 0.01, %v464_v24  ;;  %vm485_vm14 = vcmp.gt.f32.partialorder %v464_v24, 0.0 }
  0xe8   : > { %v517_v28 = vsel %vm485_vm14, %v464_v24, %v501_v11 }
  0xe9   : > { %v401_v29 = vpop.f32.mrf.mxu2  ;;  %v537_v30 = vmul.f32 %v915_v0, %v517_v28 }
  0xea   : > { %v402_v32 = vadd.f32 %v909_v59, %v401_v29 }
  0xeb   : > { %566 = vadd.xlane.f32.xlu1 %v537_v30  ;;  %552 = vadd.xlane.f32.xlu0 %v530_v31 }
  0xec   : > { %v467_v34 = vadd.f32 %v466_v26, %v402_v32  ;;  %556 = vadd.xlane.f32.xlu2 %v532_v33 }
  0xee   : > { %v502_v35 = vmul.f32 0.01, %v467_v34  ;;  %vm486_vm15 = vcmp.gt.f32.partialorder %v467_v34, 0.0 }
  0xf0   : > { %v518_v36 = vsel %vm486_vm15, %v467_v34, %v502_v35 }
  0xf1   : > { %v404_v37 = vpop.f32.mrf.mxu2  ;;  %v538_v40 = vmul.f32 %v915_v0, %v518_v36 }
  0xf2   : > { %v405_v39 = vadd.f32 %v909_v59, %v404_v37 }
  0xf4   : > { %v470_v41 = vadd.f32 %v469_v38, %v405_v39  ;;  %568 = vadd.xlane.f32.xlu2 %v538_v40 }
  0xf6   : > { %v503_v42 = vmul.f32 0.01, %v470_v41  ;;  %vm487_vm0 = vcmp.gt.f32.partialorder %v470_v41, 0.0 }
  0xf8   : > { %v519_v43 = vsel %vm487_vm0, %v470_v41, %v503_v42 }
  0xf9   : > { %v539_v44 = vmul.f32 %v915_v0, %v519_v43 }
  0xfb   : > { %570 = vadd.xlane.f32.xlu0 %v539_v44 }
 0x127   : > { %v541_v59 = vpop.xlane.xlu0 %540 }
 0x128   : > { %v576_v46 = vadd.f32 %v728_v45, %v541_v59 }
 0x12a   : > { %593 = vst.msk [vmem:[%s955_s8] sm:$0xff] %vm592_vm1, %v576_v46 }
 0x12f   : > { %v543_v47 = vpop.xlane.xlu0 %542 }
 0x130   : > { %v577_v0 = vadd.f32 %v728_v45, %v543_v47 }
 0x132   : > { %594 = vst.msk [vmem:[%s955_s8 + $0x8] sm:$0xff] %vm592_vm1, %v577_v0 }
 0x137   : > { %v545_v48 = vpop.xlane.xlu1 %544 }
 0x138   : > { %v578_v49 = vadd.f32 %v728_v45, %v545_v48 }
 0x13a   : > { %595 = vst.msk [vmem:[%s955_s8 + $0x10] sm:$0xff] %vm592_vm1, %v578_v49 }
 0x13e   : > { %v559_v50 = vpop.xlane.xlu0 %558 }
 0x13f   : > { %v585_v51 = vadd.f32 %v728_v45, %v559_v50  ;;  %v547_v52 = vpop.xlane.xlu1 %546 }
 0x140   : > { %v579_v53 = vadd.f32 %v728_v45, %v547_v52 }
 0x141   : > { %602 = vst.msk [vmem:[%s955_s8 + $0x48] sm:$0xff] %vm592_vm1, %v585_v51 }
 0x142   : > { %596 = vst.msk [vmem:[%s955_s8 + $0x18] sm:$0xff] %vm592_vm1, %v579_v53 }
 0x147   : > { %v549_v54 = vpop.xlane.xlu2 %548  ;;  %v561_v55 = vpop.xlane.xlu1 %560 }
 0x148   : > { %v580_v56 = vadd.f32 %v728_v45, %v549_v54  ;;  %v586_v57 = vadd.f32 %v728_v45, %v561_v55 }
 0x14a   : > { %597 = vst.msk [vmem:[%s955_s8 + $0x20] sm:$0xff] %vm592_vm1, %v580_v56 }
 0x14b   : > { %603 = vst.msk [vmem:[%s955_s8 + $0x50] sm:$0xff] %vm592_vm1, %v586_v57 }
 0x14f   : > { %v563_v58 = vpop.xlane.xlu2 %562  ;;  %v555_v60 = vpop.xlane.xlu1 %554 }
 0x150   : > { %v587_v61 = vadd.f32 %v728_v45, %v563_v58  ;;  %v583_v62 = vadd.f32 %v728_v45, %v555_v60 }
 0x152   : > { %604 = vst.msk [vmem:[%s955_s8 + $0x58] sm:$0xff] %vm592_vm1, %v587_v61 }
 0x153   : > { %600 = vst.msk [vmem:[%s955_s8 + $0x38] sm:$0xff] %vm592_vm1, %v583_v62 }
 0x156   : > { %v565_v63 = vpop.xlane.xlu0 %564 }
 0x157   : > { %v588_v1 = vadd.f32 %v728_v45, %v565_v63  ;;  %v551_v2 = vpop.xlane.xlu2 %550 }
 0x158   : > { %v581_v3 = vadd.f32 %v728_v45, %v551_v2 }
 0x159   : > { %605 = vst.msk [vmem:[%s955_s8 + $0x60] sm:$0xff] %vm592_vm1, %v588_v1 }
 0x15a   : > { %598 = vst.msk [vmem:[%s955_s8 + $0x28] sm:$0xff] %vm592_vm1, %v581_v3 }
 0x15e   : > { %v567_v4 = vpop.xlane.xlu1 %566  ;;  %v553_v5 = vpop.xlane.xlu0 %552 }
 0x15f   : > { %v589_v6 = vadd.f32 %v728_v45, %v567_v4  ;;  %v582_v7 = vadd.f32 %v728_v45, %v553_v5  ;;  %v557_v8 = vpop.xlane.xlu2 %556 }
 0x160   : > { %v584_v9 = vadd.f32 %v728_v45, %v557_v8 }
 0x161   : > { %606 = vst.msk [vmem:[%s955_s8 + $0x68] sm:$0xff] %vm592_vm1, %v589_v6 }
 0x162   : > { %599 = vst.msk [vmem:[%s955_s8 + $0x30] sm:$0xff] %vm592_vm1, %v582_v7 }
 0x163   : > { %601 = vst.msk [vmem:[%s955_s8 + $0x40] sm:$0xff] %vm592_vm1, %v584_v9 }
 0x167   : > { %v569_v10 = vpop.xlane.xlu2 %568 }
 0x168   : > { %v590_v12 = vadd.f32 %v728_v45, %v569_v10 }
 0x16a   : > { %607 = vst.msk [vmem:[%s955_s8 + $0x70] sm:$0xff] %vm592_vm1, %v590_v12 }
 0x16e   : > { %v571_v13 = vpop.xlane.xlu0 %570 }
 0x16f   : > { %v591_v14 = vadd.f32 %v728_v45, %v571_v13 }
 0x171   : > { %608 = vst.msk [vmem:[%s955_s8 + $0x78] sm:$0xff] %vm592_vm1, %v591_v14 }
 0x172 PF: > { %s17_s20 = sadd.s32 1, %s735_s20  }
 0x173   : > { %p14_p4 = scmp.ge.s32.totalorder %s17_s20, 4  }
 0x175   :  { %16 = sbr.rel (!%p14_p4) target bundleno = 3 (0x3), region = 70 }

</bundles_post_ra>
